<compile_context>
chip_gen: v7x
topology: tpu7x:2x2x1
jax: 0.10.0
libtpu: 0.0.40
codegen_flags: <defaults>
</compile_context>

<pallas_src>
import jax
import jax.numpy as jnp
from jax.experimental import pallas as pl
from jax.experimental.pallas import tpu as pltpu


def conv1x1_vpu_kernel(x_ref, w_ref, badd_ref, o_ref):
    # x_ref:    (Cin, TP)   pixels on the lane axis
    # w_ref:    (Cout, Cin) tiny weight tile
    # badd_ref: (Cout, 1)   bias + other, pre-folded
    # o_ref:    (Cout, TP)  lane-dense output
    x = x_ref[...]
    w = w_ref[...]
    out = badd_ref[...]                       # (Cout, 1)
    for c in range(w.shape[1]):               # Cin == 3 -> 3 broadcast FMAs on the VPU
        out = out + w[:, c:c + 1] * x[c:c + 1, :]
    o_ref[...] = out                          # (Cout, TP) unmasked stores


def conv1x1_pad1_add(x_nchw, weight, bias, other):
    """Conv2d(Cin, Cout, k=1, stride=1, padding=1)(x) + other, NCHW in / NCHW out."""
    N, Cin, H, W = x_nchw.shape
    Cout = weight.shape[0]
    P = H * W

    # NCHW -> (N, Cin, H*W): pure reshape, channels already lead, pixels go to lanes.
    x_flat = x_nchw.reshape(N, Cin, P).astype(jnp.float32)
    w_mat = weight.reshape(Cout, Cin).astype(jnp.float32)
    badd = (bias.reshape(Cout) + other.reshape(Cout)).astype(jnp.float32)
    badd_col = badd.reshape(Cout, 1)

    # Pixel-axis tile: multiple of 128 for lane alignment; pad P up if needed.
    TP = 1024 if P >= 1024 else ((P + 127) // 128) * 128
    n_tiles = pl.cdiv(P, TP)
    P_pad = n_tiles * TP
    if P_pad != P:
        x_flat = jnp.pad(x_flat, ((0, 0), (0, 0), (0, P_pad - P)))

    out_flat = pl.pallas_call(
        conv1x1_vpu_kernel,
        out_shape=jax.ShapeDtypeStruct((N, Cout, P_pad), jnp.float32),
        grid=(N, n_tiles),
        in_specs=[
            pl.BlockSpec((None, Cin, TP), lambda n, p: (n, 0, p)),
            pl.BlockSpec((Cout, Cin), lambda n, p: (0, 0)),
            pl.BlockSpec((Cout, 1), lambda n, p: (0, 0)),
        ],
        out_specs=pl.BlockSpec((None, Cout, TP), lambda n, p: (n, 0, p)),
        compiler_params=pltpu.CompilerParams(
            dimension_semantics=("parallel", "parallel")),
    )(x_flat, w_mat, badd_col)

    interior = out_flat[:, :, :P].reshape(N, Cout, H, W)

    # padding=1 + 1x1 kernel: every border output pixel is exactly bias + other.
    full = jnp.broadcast_to(badd.reshape(1, Cout, 1, 1), (N, Cout, H + 2, W + 2))
    return full.at[:, :, 1:H + 1, 1:W + 1].set(interior)


def reference(x_nchw, weight, bias, other):
    """Plain-JAX reference: Conv2d(k=1, pad=1) + other (PyTorch semantics)."""
    y = jax.lax.conv_general_dilated(
        x_nchw.astype(jnp.float32),
        weight.astype(jnp.float32),          # (Cout, Cin, 1, 1)
        window_strides=(1, 1),
        padding=((1, 1), (1, 1)),
        dimension_numbers=("NCHW", "OIHW", "NCHW"),
    )
    y = y + bias.reshape(1, -1, 1, 1)
    return y + other                          # other broadcasts as (1, Cout, 1, 1)


if __name__ == "__main__":
    key = jax.random.PRNGKey(0)
    k_x, k_w, k_b, k_o = jax.random.split(key, 4)

    # Shapes implied by the module: x2 = randn(1, 3, 64, 64), Conv2d(3 -> 8, k=1, pad=1)
    N, Cin, H, W = 1, 3, 64, 64
    Cout = 8

    x = jax.random.normal(k_x, (N, Cin, H, W), dtype=jnp.float32)
    bound = 1.0 / (Cin ** 0.5)   # PyTorch-style uniform init bound
    weight = jax.random.uniform(k_w, (Cout, Cin, 1, 1), minval=-bound, maxval=bound,
                                dtype=jnp.float32)
    bias = jax.random.uniform(k_b, (Cout,), minval=-bound, maxval=bound,
                              dtype=jnp.float32)
    other = jax.random.normal(k_o, (1, Cout, 1, 1), dtype=jnp.float32)

    out = jax.block_until_ready(conv1x1_pad1_add(x, weight, bias, other))
    ref = jax.block_until_ready(reference(x, weight, bias, other))

    assert out.shape == (N, Cout, H + 2, W + 2), out.shape
    assert jnp.allclose(out, ref, atol=1e-5), float(jnp.max(jnp.abs(out - ref)))

    print("KERNEL_OK")
</pallas_src>

<mosaic_0001>
module attributes {stable_mosaic.version = 11 : i64} {
  func.func @conv1x1_vpu_kernel(%arg0: i32, %arg1: i32, %arg2: memref<1x3x1024xf32, #tpu.memory_space<vmem>>, %arg3: memref<8x3xf32, #tpu.memory_space<vmem>>, %arg4: memref<8x1xf32, #tpu.memory_space<vmem>>, %arg5: memref<1x8x1024xf32, #tpu.memory_space<vmem>>) attributes {dimension_semantics = [#tpu.dimension_semantics<parallel>, #tpu.dimension_semantics<parallel>], iteration_bounds = array<i64: 1, 4>, scalar_prefetch = 0 : i64, scratch_operands = 0 : i64, tpu.core_type = #tpu.core_type<tc>, window_params = [{transform_indices = @transform_0, window_bounds = array<i64: 1, 3, 1024>}, {pipeline_mode = #tpu.pipeline_mode<synchronous>, transform_indices = @transform_1, window_bounds = array<i64: 8, 3>}, {pipeline_mode = #tpu.pipeline_mode<synchronous>, transform_indices = @transform_2, window_bounds = array<i64: 8, 1>}, {transform_indices = @transform_3, window_bounds = array<i64: 1, 8, 1024>}]} {
    %c0 = arith.constant 0 : index
    %c0_0 = arith.constant 0 : index
    %c0_1 = arith.constant 0 : index
    %0 = vector.load %arg2[%c0, %c0_0, %c0_1] : memref<1x3x1024xf32, #tpu.memory_space<vmem>>, vector<1x3x1024xf32>
    %1 = vector.shape_cast %0 : vector<1x3x1024xf32> to vector<3x1024xf32>
    %c0_2 = arith.constant 0 : index
    %c0_3 = arith.constant 0 : index
    %2 = vector.load %arg3[%c0_2, %c0_3] : memref<8x3xf32, #tpu.memory_space<vmem>>, vector<8x3xf32>
    %c0_4 = arith.constant 0 : index
    %c0_5 = arith.constant 0 : index
    %3 = vector.load %arg4[%c0_4, %c0_5] : memref<8x1xf32, #tpu.memory_space<vmem>>, vector<8x1xf32>
    %4 = vector.extract_strided_slice %2 {offsets = [0, 0], sizes = [8, 1], strides = [1, 1]} : vector<8x3xf32> to vector<8x1xf32>
    %5 = vector.extract_strided_slice %1 {offsets = [0, 0], sizes = [1, 1024], strides = [1, 1]} : vector<3x1024xf32> to vector<1x1024xf32>
    %6 = vector.broadcast %4 : vector<8x1xf32> to vector<8x1024xf32>
    %7 = vector.broadcast %5 : vector<1x1024xf32> to vector<8x1024xf32>
    %8 = arith.mulf %6, %7 : vector<8x1024xf32>
    %9 = vector.broadcast %3 : vector<8x1xf32> to vector<8x1024xf32>
    %10 = arith.addf %9, %8 : vector<8x1024xf32>
    %11 = vector.extract_strided_slice %2 {offsets = [0, 1], sizes = [8, 1], strides = [1, 1]} : vector<8x3xf32> to vector<8x1xf32>
    %12 = vector.extract_strided_slice %1 {offsets = [1, 0], sizes = [1, 1024], strides = [1, 1]} : vector<3x1024xf32> to vector<1x1024xf32>
    %13 = vector.broadcast %11 : vector<8x1xf32> to vector<8x1024xf32>
    %14 = vector.broadcast %12 : vector<1x1024xf32> to vector<8x1024xf32>
    %15 = arith.mulf %13, %14 : vector<8x1024xf32>
    %16 = arith.addf %10, %15 : vector<8x1024xf32>
    %17 = vector.extract_strided_slice %2 {offsets = [0, 2], sizes = [8, 1], strides = [1, 1]} : vector<8x3xf32> to vector<8x1xf32>
    %18 = vector.extract_strided_slice %1 {offsets = [2, 0], sizes = [1, 1024], strides = [1, 1]} : vector<3x1024xf32> to vector<1x1024xf32>
    %19 = vector.broadcast %17 : vector<8x1xf32> to vector<8x1024xf32>
    %20 = vector.broadcast %18 : vector<1x1024xf32> to vector<8x1024xf32>
    %21 = arith.mulf %19, %20 : vector<8x1024xf32>
    %22 = arith.addf %16, %21 : vector<8x1024xf32>
    %c0_6 = arith.constant 0 : index
    %c0_7 = arith.constant 0 : index
    %c0_8 = arith.constant 0 : index
    %23 = vector.load %arg5[%c0_6, %c0_7, %c0_8] : memref<1x8x1024xf32, #tpu.memory_space<vmem>>, vector<1x8x1024xf32>
    %24 = vector.shape_cast %23 : vector<1x8x1024xf32> to vector<8x1024xf32>
    %25 = vector.shape_cast %22 : vector<8x1024xf32> to vector<1x8x1024xf32>
    tpu.vector_store %arg5[%c0_6, %c0_7, %c0_8], %25 {strides = array<i32>} : memref<1x8x1024xf32, #tpu.memory_space<vmem>>, vector<1x8x1024xf32>,
    return
  }
  func.func @transform_0(%arg0: i32, %arg1: i32) -> (i32, i32, i32) {
    %c0_i32 = arith.constant 0 : i32
    %c0_i32_0 = arith.constant 0 : i32
    return %arg0, %c0_i32, %arg1 : i32, i32, i32
  }
  func.func @transform_1(%arg0: i32, %arg1: i32) -> (i32, i32) {
    %c0_i32 = arith.constant 0 : i32
    %c0_i32_0 = arith.constant 0 : i32
    %c0_i32_1 = arith.constant 0 : i32
    return %c0_i32, %c0_i32_0 : i32, i32
  }
  func.func @transform_2(%arg0: i32, %arg1: i32) -> (i32, i32) {
    %c0_i32 = arith.constant 0 : i32
    %c0_i32_0 = arith.constant 0 : i32
    %c0_i32_1 = arith.constant 0 : i32
    return %c0_i32, %c0_i32_0 : i32, i32
  }
  func.func @transform_3(%arg0: i32, %arg1: i32) -> (i32, i32, i32) {
    %c0_i32 = arith.constant 0 : i32
    %c0_i32_0 = arith.constant 0 : i32
    return %arg0, %c0_i32, %arg1 : i32, i32, i32
  }
}

</mosaic_0001>

<bundles_post_ra>
// kernel: tpu_custom_call.1
= control target key start
LH: loop header
LB: loop body
LE: loop exit
PB: predicated region body
PF: predicated region fallthrough
CT: control target
= control target key end

     0   :  { %8 = vsyncpa [#allocation3], 0  ;;  %s894_s0 = inlined_call_operand.vmem [shape: f32[1,3,4096], index: 0, kind: input, shape index: {}]   ;;  %s895_s1 = inlined_call_operand.vmem [shape: f32[8,3], index: 1, kind: input, shape index: {}]   ;;  %s896_s2 = inlined_call_operand.vmem [shape: f32[8,1], index: 2, kind: input, shape index: {}]   ;;  %s897_s3 = inlined_call_operand.hbm [shape: f32[1,8,4096], index: 3, kind: output, shape index: {}]  }
   0x1   :  { %10 = vsyncpa [#allocation3 + $0x1], 0  ;;  %s773_s12 = smov 0   ;;  %s775_s13 = smov 0  }
   0x2   :  { %s777_s14 = smov 0   ;;  %s779_s15 = smov 0  }
   0x3   :  { %s781_s16 = smov 0   ;;  %s783_s17 = smov 0  }
   0x4 LB: > { %s593_s18 = sadd.s32 4294967295, %s747_s17   ;;  %s594_s19 = sadd.s32 4294967294, %s747_s17   ;;  %s747_s17 = sphi %s783_s17, %s16_s17   ;;  %s743_s16 = sphi %s781_s16, %s904_s16   ;;  %s739_s15 = sphi %s779_s15, %s903_s15   ;;  %s735_s14 = sphi %s777_s14, %s902_s14   ;;  %s731_s13 = sphi %s775_s13, %s901_s13   ;;  %s727_s12 = sphi %s773_s12, %s900_s12  }
   0x5   : > { %s25_s20 = sadd.s32 1, %s743_s16  ;;  %s107_s21 = sadd.s32 1, %s735_s14 }
   0x6   : > { %p26_p0 = scmp.ge.s32.totalorder %s25_s20, 4  ;;  %p117_p1 = scmp.ne.s32.totalorder %s735_s14, %s731_s13 }
   0x7   : > { %p118_p2 = scmp.eq.s32.totalorder %s593_s18, 3  ;;  %p123_p3 = scmp.ne.s32.totalorder %s731_s13, %s727_s12 }
   0x8   : > { %s906_s20 = smov (%p26_p0, %s25_s20), 0  ;;  %p124_p5 = scmp.eq.s32.totalorder %s594_s19, 3 }
   0x9   : > { %p813_p4 = por %p118_p2, %p117_p1  ;;  %s103_s23 = ssub.s32 %s743_s16, %s906_s20 }
   0xa   : > { %p597_p6 = scmp.ge.s32.totalorder %s747_s17, 1  ;;  %p105_p7 = scmp.eq.s32.totalorder %s103_s23, 0 }
   0xb   : > { %p820_p8 = por %p124_p5, %p123_p3  ;;  %p161_p9 = scmp.lt.s32.totalorder %s747_s17, 5 }
   0xc   : > { %s826_s25 = scalar_select %p105_p7, %s735_s14, %s107_s21  }
   0xd   : > { %p162_p10 = pnand %p597_p6, %p161_p9 }
   0xe   : > { %v204_v0 = vld [vmem:[%s895_s1] sm:$0xff] (!%p162_p10)  ;;  %v749_v1 = vmov (!%p162_p10), 0   ;;  %v750_v2 = vmov (!%p162_p10), 1   ;;  %v751_v4 = vmov (!%p162_p10), 2   ;;  %s599_s30 = sshll.u32 (!%p162_p10), %s739_s15, 3  ;;  %v215_v5 = vlaneseq (!%p162_p10)  ;;  %s186_s8 = sand.u32 (!%p162_p10), 1, %s731_s13  }
   0xf   : > { %165 = sbr.rel (%p162_p10) target bundleno = 173 (0xad), region = 32  ;;  %665 = vset.pattern.permute.xlu0 (!%p162_p10), %v749_v1  ;;  %666 = vset.pattern.permute.xlu1 (!%p162_p10), %v750_v2  ;;  %v205_v3 = vld [vmem:[%s896_s2] sm:$0xff] (!%p162_p10)  ;;  %p192_p11 = scmp.lt.s32.totalorder (!%p162_p10), %s599_s30, 31 }
  0x10   : > { %208 = vperm.xlu0 (!%p162_p10), %665, %v204_v0   ;;  %309 = vperm.xlu1 (!%p162_p10), %666, %v204_v0   ;;  %v216_v6 = vshrl.u32 (!%p162_p10), %v215_v5, 7  ;;  %s598_s9 = sshll.u32 (!%p162_p10), %s186_s8, 6  ;;  %s606_s10 = sshll.u32 (!%p162_p10), %s739_s15, 10 }
  0x11   : > { %s188_s11 = scalar_lea.vmem (!%p162_p10), [#allocation2], %s598_s9  ;;  %s845_s15 = scalar_lea.hbm (!%p162_p10), %s897_s3, %s606_s10 }
  0x12   : > { %v217_v7 = vsub.s32 (!%p162_p10), 0, %v216_v6  ;;  %v221_v8 = vsub.s32 (!%p162_p10), 4, %v216_v6  ;;  %v314_v21 = vsub.s32 (!%p162_p10), 1, %v216_v6  ;;  %v318_v22 = vsub.s32 (!%p162_p10), 5, %v216_v6  ;;  %s517_s18 = sshll.u32 (!%p162_p10), %s188_s11, 4  ;;  %s501_s23 = scalar_lea.sflag (!%p162_p10), [#allocation3], %s186_s8  ;;  %s847_s18 = int_to_ptr.vmem [resolvable:$true] %s517_s18 }
  0x13   : > { %v406_v23 = vsub.s32 (!%p162_p10), 2, %v216_v6  ;;  %v410_v24 = vsub.s32 (!%p162_p10), 6, %v216_v6  ;;  %s669_s26 = scalar_lea.vmem (!%p162_p10), %s847_s18, 1024  ;;  %s752_s27 = smov (!%p162_p10), [#allocation2]  }
  0x14   : > { %297 = vperm.xlu0 (!%p162_p10), %665, %v205_v3   ;;  %667 = vset.pattern.permute.xlu1 (!%p162_p10), %v751_v4  ;;  %p670_p12 = scmp.ne.s32.totalorder (!%p162_p10), %s847_s18, %s669_s26  ;;  %s673_s28 = sshll.u32 (!%p162_p10), %s752_s27, 4  ;;  %s674_s28 = int_to_ptr.vmem [resolvable:$false] %s673_s28 }
  0x15   : > { %401 = vperm.xlu1 (!%p162_p10), %667, %v204_v0   ;;  %s675_s29 = scalar_lea.vmem (!%p162_p10), %s674_s28, 2048  ;;  %p676_p1 = scmp.lt.s32.totalorder (!%p162_p10), %s847_s18, %s674_s28 }
  0x16   : > { %s908_s30 = smov (!%p192_p11, %s599_s30), 31  ;;  %p671_p13 = pnand %p670_p12, %p813_p4 }
  0x17   : > { %s600_s4 = sshll.u32 %s908_s30, 2  ;;  %p677_p2 = scmp.lt.s32.totalorder %s675_s29, %s669_s26 }
  0x18   : > { %668 = vset.pattern.permute.xlu0 %v751_v4  ;;  %s197_s7 = scalar_lea.vmem %s894_s0, %s600_s4  ;;  %p672_p0 = pneg %p671_p13 }
  0x19   : > { %v200_v9 = vld [vmem:[%s197_s7] sm:$0x77]  ;;  %v201_v10 = vld [vmem:[%s197_s7 + $0x8] sm:$0x77]  ;;  %v202_v11 = vld [vmem:[%s197_s7 + $0x10] sm:$0x77]  ;;  %p678_p3 = por %p677_p2, %p676_p1 }
  0x1a   : > { %v203_v12 = vld [vmem:[%s197_s7 + $0x18] sm:$0x77]  ;;  %v218_v13 = vrot.slane %v200_v9, %v217_v7  ;;  %v222_v14 = vrot.slane %v200_v9, %v221_v8  ;;  %v226_v15 = vrot.slane %v201_v10, %v217_v7  ;;  %v230_v16 = vrot.slane %v201_v10, %v221_v8 }
  0x1b   : > { %v234_v17 = vrot.slane %v202_v11, %v217_v7  ;;  %v238_v18 = vrot.slane %v202_v11, %v221_v8  ;;  %v242_v19 = vrot.slane %v203_v12, %v217_v7  ;;  %v246_v20 = vrot.slane %v203_v12, %v221_v8  ;;  %p679_p5 = pnand %p678_p3, %p672_p0 }
  0x1c   : > { %v258_v25 = vrot.slane %v218_v13, %v217_v7  ;;  %v262_v26 = vrot.slane %v222_v14, %v217_v7  ;;  %v266_v27 = vrot.slane %v226_v15, %v217_v7  ;;  %v270_v28 = vrot.slane %v230_v16, %v217_v7 }
  0x1d   : > { %v274_v29 = vrot.slane %v234_v17, %v217_v7  ;;  %v278_v30 = vrot.slane %v238_v18, %v217_v7  ;;  %v282_v31 = vrot.slane %v242_v19, %v217_v7  ;;  %v286_v32 = vrot.slane %v246_v20, %v217_v7 }
  0x1e   : > { %v315_v33 = vrot.slane %v200_v9, %v314_v21  ;;  %v319_v34 = vrot.slane %v200_v9, %v318_v22  ;;  %v323_v35 = vrot.slane %v201_v10, %v314_v21  ;;  %v327_v36 = vrot.slane %v201_v10, %v318_v22 }
  0x1f   : > { %v331_v37 = vrot.slane %v202_v11, %v314_v21  ;;  %v335_v38 = vrot.slane %v202_v11, %v318_v22  ;;  %v339_v39 = vrot.slane %v203_v12, %v314_v21  ;;  %v343_v40 = vrot.slane %v203_v12, %v318_v22 }
  0x20   : > { %v407_v41 = vrot.slane %v200_v9, %v406_v23  ;;  %v411_v42 = vrot.slane %v200_v9, %v410_v24  ;;  %v415_v43 = vrot.slane %v201_v10, %v406_v23  ;;  %v419_v44 = vrot.slane %v201_v10, %v410_v24 }
  0x21   : > { %v423_v45 = vrot.slane %v202_v11, %v406_v23  ;;  %v427_v46 = vrot.slane %v202_v11, %v410_v24  ;;  %v431_v47 = vrot.slane %v203_v12, %v406_v23  ;;  %v435_v48 = vrot.slane %v203_v12, %v410_v24 }
  0x22   : > { %v355_v49 = vrot.slane %v315_v33, %v314_v21  ;;  %v359_v50 = vrot.slane %v319_v34, %v314_v21  ;;  %v363_v51 = vrot.slane %v323_v35, %v314_v21  ;;  %v367_v52 = vrot.slane %v327_v36, %v314_v21 }
  0x23   : > { %v371_v53 = vrot.slane %v331_v37, %v314_v21  ;;  %v375_v54 = vrot.slane %v335_v38, %v314_v21  ;;  %v379_v55 = vrot.slane %v339_v39, %v314_v21  ;;  %v383_v56 = vrot.slane %v343_v40, %v314_v21 }
  0x24   : > { %v447_v57 = vrot.slane %v407_v41, %v406_v23  ;;  %v451_v58 = vrot.slane %v411_v42, %v406_v23  ;;  %v455_v59 = vrot.slane %v415_v43, %v406_v23  ;;  %v459_v60 = vrot.slane %v419_v44, %v406_v23 }
  0x25   : > { %v463_v63 = vrot.slane %v423_v45, %v406_v23  ;;  %v467_v0 = vrot.slane %v427_v46, %v406_v23  ;;  %v471_v1 = vrot.slane %v431_v47, %v406_v23  ;;  %v475_v2 = vrot.slane %v435_v48, %v406_v23 }
  0x8f   : > { %v209_v61 = vpop.permute.xlu0 %208  ;;  %v310_v62 = vpop.permute.xlu1 %309 }
  0x90   : > { %v287_v3 = vmul.f32 %v258_v25, %v209_v61  ;;  %v288_v4 = vmul.f32 %v262_v26, %v209_v61  ;;  %v289_v5 = vmul.f32 %v266_v27, %v209_v61  ;;  %v290_v6 = vmul.f32 %v270_v28, %v209_v61 }
  0x91   : > { %v291_v7 = vmul.f32 %v274_v29, %v209_v61  ;;  %v292_v8 = vmul.f32 %v278_v30, %v209_v61  ;;  %v293_v9 = vmul.f32 %v282_v31, %v209_v61  ;;  %v294_v10 = vmul.f32 %v286_v32, %v209_v61 }
  0x92   : > { %v384_v11 = vmul.f32 %v355_v49, %v310_v62  ;;  %v385_v12 = vmul.f32 %v359_v50, %v310_v62  ;;  %v386_v13 = vmul.f32 %v363_v51, %v310_v62  ;;  %v387_v14 = vmul.f32 %v367_v52, %v310_v62 }
  0x93   : > { %v298_v15 = vpop.permute.xlu0 %297  ;;  %v388_v16 = vmul.f32 %v371_v53, %v310_v62  ;;  %v389_v17 = vmul.f32 %v375_v54, %v310_v62  ;;  %v390_v18 = vmul.f32 %v379_v55, %v310_v62  ;;  %v391_v19 = vmul.f32 %v383_v56, %v310_v62 }
  0x94   : > { %v300_v20 = vadd.f32 %v298_v15, %v287_v3  ;;  %v301_v21 = vadd.f32 %v298_v15, %v288_v4  ;;  %v302_v22 = vadd.f32 %v298_v15, %v289_v5  ;;  %v303_v23 = vadd.f32 %v298_v15, %v290_v6  ;;  %v402_v28 = vpop.permute.xlu1 %401 }
  0x95   : > { %v304_v24 = vadd.f32 %v298_v15, %v291_v7  ;;  %v305_v25 = vadd.f32 %v298_v15, %v292_v8  ;;  %v306_v26 = vadd.f32 %v298_v15, %v293_v9  ;;  %v307_v27 = vadd.f32 %v298_v15, %v294_v10 }
  0x96   : > { %v392_v29 = vadd.f32 %v384_v11, %v300_v20  ;;  %v393_v30 = vadd.f32 %v385_v12, %v301_v21  ;;  %v394_v31 = vadd.f32 %v386_v13, %v302_v22  ;;  %v395_v32 = vadd.f32 %v387_v14, %v303_v23 }
  0x97   : > { %v396_v33 = vadd.f32 %v388_v16, %v304_v24  ;;  %v397_v34 = vadd.f32 %v389_v17, %v305_v25  ;;  %v398_v35 = vadd.f32 %v390_v18, %v306_v26  ;;  %v399_v36 = vadd.f32 %v391_v19, %v307_v27 }
  0x98   : > { %v476_v37 = vmul.f32 %v447_v57, %v402_v28  ;;  %v477_v38 = vmul.f32 %v451_v58, %v402_v28  ;;  %v478_v39 = vmul.f32 %v455_v59, %v402_v28  ;;  %v479_v40 = vmul.f32 %v459_v60, %v402_v28 }
  0x99   : > { %v480_v41 = vmul.f32 %v463_v63, %v402_v28  ;;  %v481_v42 = vmul.f32 %v467_v0, %v402_v28  ;;  %v482_v43 = vmul.f32 %v471_v1, %v402_v28  ;;  %v483_v44 = vmul.f32 %v475_v2, %v402_v28 }
  0x9a   : > { %v484_v45 = vadd.f32 %v476_v37, %v392_v29  ;;  %v485_v46 = vadd.f32 %v477_v38, %v393_v30  ;;  %v486_v47 = vadd.f32 %v478_v39, %v394_v31  ;;  %v487_v48 = vadd.f32 %v479_v40, %v395_v32 }
  0x9b   : > { %v488_v49 = vadd.f32 %v480_v41, %v396_v33  ;;  %v489_v50 = vadd.f32 %v481_v42, %v397_v34  ;;  %v490_v51 = vadd.f32 %v482_v43, %v398_v35  ;;  %v491_v52 = vadd.f32 %v483_v44, %v399_v36 }
  0x9c   : > { %492 = vst [vmem:[%s188_s11] sm:$0xff] %v484_v45  ;;  %493 = vst [vmem:[%s188_s11 + $0x8] sm:$0xff] %v485_v46 }
  0x9d   : > { %494 = vst [vmem:[%s188_s11 + $0x10] sm:$0xff] %v486_v47  ;;  %495 = vst [vmem:[%s188_s11 + $0x18] sm:$0xff] %v487_v48 }
  0x9e   : > { %496 = vst [vmem:[%s188_s11 + $0x20] sm:$0xff] %v488_v49  ;;  %497 = vst [vmem:[%s188_s11 + $0x28] sm:$0xff] %v489_v50 }
  0x9f   : > { %498 = vst [vmem:[%s188_s11 + $0x30] sm:$0xff] %v490_v51  ;;  %499 = vst [vmem:[%s188_s11 + $0x38] sm:$0xff] %v491_v52 }
  0xa0   : > { %682 = shalt.err (!%p679_p5)
}
  0xa1   : > { %s683_s30 = scalar_lea.hbm %s845_s15, 1024  ;;  %s687_s6 = scalar_lea.hbm %s897_s3, 4096 }
  0xa2   : > { %p684_p6 = scmp.ne.s32.totalorder %s845_s15, %s683_s30  ;;  %p688_p10 = scmp.lt.u32.totalorder %s845_s15, %s897_s3 }
  0xa3   : > { %p689_p11 = scmp.lt.u32.totalorder %s687_s6, %s683_s30  ;;  %p691_p13 = scmp.lt.u32.totalorder %s683_s30, %s845_s15 }
  0xa4   : > { %p685_p7 = pnand %p684_p6, %p813_p4 }
  0xa5   : > { %p690_p12 = por %p689_p11, %p688_p10 }
  0xa6   : > { %p686_p9 = pneg %p685_p7 }
  0xa7   : > { %p692_p0 = por %p691_p13, %p690_p12 }
  0xa9   : > { %p693_p1 = pnand %p692_p0, %p686_p9 }
  0xab   : > { %696 = shalt.err (!%p693_p1)
}
  0xac   : > { %607 = dma.vmem_to_hbm [thread:$0]  (%p813_p4), %s847_s18, 1024, %s845_s15, %s501_s23  }
  0xad PF: > { %p613_p2 = scmp.ge.s32.totalorder %s747_s17, 2  ;;  %s529_s9 = sand.u32 1, %s727_s12  }
  0xae   : > { %s530_s10 = scalar_lea.sflag [#allocation3], %s529_s9 }
  0xaf   : > { %p610_p3 = pnand %p613_p2, %p820_p8 }
  0xb1   : > { %722 = dma.done.wait (!%p610_p3), %s530_s10, 1024  }
  0xb2   : > { %724 = vsyncadd (!%p610_p3), %s530_s10, 4294966272  ;;  %s16_s17 = sadd.s32 1, %s747_s17   ;;  %s900_s12 = smov %s731_s13 }
  0xb3   : > { %p13_p5 = scmp.ge.s32.totalorder %s16_s17, 6   ;;  %s901_s13 = smov %s735_s14 }
  0xb4   : > { %s902_s14 = smov %s826_s25  ;;  %s903_s15 = smov %s743_s16 }
  0xb5   : > { %s904_s16 = smov %s906_s20  ;;  %15 = sbr.rel (!%p13_p5) target bundleno = 4 (0x4), region = 67 }
  0xbc   :  { %535 = vsyncpa [#allocation3], 1 }
  0xbd   :  { %537 = vsyncpa [#allocation3 + $0x1], 1 }

</bundles_post_ra>
